<compile_context>
chip_gen: v7x
topology: tpu7x:2x2x1
jax: 0.10.0
libtpu: 0.0.40
codegen_flags: <defaults>
</compile_context>

<pallas_src>
import jax
import jax.numpy as jnp
from jax.experimental import pallas as pl
from jax.experimental.pallas import tpu as pltpu

BN_EPS = 1e-5


def _folded_bn_scale_shift(h, gamma, beta):
    """Training-mode BN folded to a single per-feature scale/shift."""
    mean = jnp.mean(h, axis=0, keepdims=True)
    d = h - mean
    var = jnp.mean(d * d, axis=0, keepdims=True)
    scale = gamma * jax.lax.rsqrt(var + BN_EPS)      # rsqrt -> EUP (free slot)
    shift = beta - mean * scale
    return scale, shift


def resblock_kernel(x_ref, w1_ref, w2_ref, bn_ref, o_ref):
    x = x_ref[...]                                   # (B, Dp) f32
    g1, be1 = bn_ref[0:1, :], bn_ref[1:2, :]
    g2, be2 = bn_ref[2:3, :], bn_ref[3:4, :]

    # fc1 (bias dropped: cancelled by the BN mean subtraction).
    # bf16 operands, f32 accumulate on the MXU.
    h = jnp.dot(x.astype(jnp.bfloat16), w1_ref[...],
                preferred_element_type=jnp.float32)
    s1, t1 = _folded_bn_scale_shift(h, g1, be1)
    h = jnp.maximum(h * s1 + t1, 0.0)                # bn1 + relu fused

    # fc2 (bias dropped)
    h2 = jnp.dot(h.astype(jnp.bfloat16), w2_ref[...],
                 preferred_element_type=jnp.float32)
    s2, t2 = _folded_bn_scale_shift(h2, g2, be2)

    # bn2 + residual (downsample is None => residual = x) + relu, fused
    o_ref[...] = jnp.maximum(h2 * s2 + t2 + x, 0.0).astype(o_ref.dtype)


def _full_spec(shape):
    # single grid point, whole-array block resident in VMEM
    return pl.BlockSpec(shape, lambda: (0,) * len(shape))


def resblock_forward(x, params):
    """x: (B, input_units) float32. params: dict (see init_params)."""
    B, Din = x.shape
    Dout = params["w1"].shape[1]
    assert Din == Dout, "downsample=None requires input_units == output_units"

    # Lane-dense padding: round feature dim up to a multiple of 128.
    Dp = max(128, int(pl.cdiv(Dout, 128)) * 128)
    pad = Dp - Dout

    xp = jnp.pad(x, ((0, 0), (0, pad)))
    w1 = jnp.pad(params["w1"], ((0, pad), (0, pad))).astype(jnp.bfloat16)
    w2 = jnp.pad(params["w2"], ((0, pad), (0, pad))).astype(jnp.bfloat16)

    pad_g = lambda g: jnp.pad(g, ((0, 0), (0, pad)), constant_values=1.0)
    pad_b = lambda b: jnp.pad(b, ((0, 0), (0, pad)))
    bn_packed = jnp.concatenate(
        [pad_g(params["g1"]), pad_b(params["be1"]),
         pad_g(params["g2"]), pad_b(params["be2"]),
         jnp.zeros((4, Dp), jnp.float32)], axis=0)   # (8, Dp) single tile

    out = pl.pallas_call(
        resblock_kernel,
        out_shape=jax.ShapeDtypeStruct((B, Dp), x.dtype),
        in_specs=[
            _full_spec((B, Dp)),    # x (zero-padded features)
            _full_spec((Dp, Dp)),   # W1 (bf16, padded)
            _full_spec((Dp, Dp)),   # W2 (bf16, padded)
            _full_spec((8, Dp)),    # packed [gamma1, beta1, gamma2, beta2, 0..]
        ],
        out_specs=_full_spec((B, Dp)),
        compiler_params=pltpu.CompilerParams(
            vmem_limit_bytes=64 * 1024 * 1024),
    )(xp, w1, w2, bn_packed)

    # TODO(synk): for large Dout this single-block design should become a
    # feature-tiled two-pass grid (fc1+bn1 pass, then K-tiled fc2+bn2 with a
    # VMEM accumulator) so weights/activations pipeline through VMEM instead
    # of being fully resident; BN batch stats require the full batch per tile.
    return out[:, :Dout]


def init_params(key, input_units, output_units):
    """PyTorch-style init: Linear ~ U(-1/sqrt(fan_in), 1/sqrt(fan_in)),
       BN gamma=1, beta=0. Weights stored as (in, out) == PyTorch weight.T.
       Biases are kept only for the exact-semantics reference; the kernel
       drops them (training-mode BN cancels them)."""
    k1, k2, k3, k4 = jax.random.split(key, 4)
    bound1 = 1.0 / jnp.sqrt(input_units)
    bound2 = 1.0 / jnp.sqrt(output_units)
    return {
        "w1": jax.random.uniform(k1, (input_units, output_units),
                                 jnp.float32, -bound1, bound1),
        "b1": jax.random.uniform(k2, (1, output_units),
                                 jnp.float32, -bound1, bound1),
        "g1": jnp.ones((1, output_units), jnp.float32),
        "be1": jnp.zeros((1, output_units), jnp.float32),
        "w2": jax.random.uniform(k3, (output_units, output_units),
                                 jnp.float32, -bound2, bound2),
        "b2": jax.random.uniform(k4, (1, output_units),
                                 jnp.float32, -bound2, bound2),
        "g2": jnp.ones((1, output_units), jnp.float32),
        "be2": jnp.zeros((1, output_units), jnp.float32),
    }


def _bn_ref(h, g, b):
    m = jnp.mean(h, axis=0, keepdims=True)
    v = jnp.mean((h - m) ** 2, axis=0, keepdims=True)
    return (h - m) * jax.lax.rsqrt(v + BN_EPS) * g + b


def resblock_reference_f32(x, p):
    """Exact f32 PyTorch training-mode forward (includes the fc biases)."""
    h = x @ p["w1"] + p["b1"]
    h = jnp.maximum(_bn_ref(h, p["g1"], p["be1"]), 0.0)
    h2 = h @ p["w2"] + p["b2"]
    return jnp.maximum(_bn_ref(h2, p["g2"], p["be2"]) + x, 0.0)


def resblock_reference_kernel_semantics(x, p):
    """Mirrors the kernel's arithmetic: bf16 matmul operands, biases dropped."""
    dot = lambda a, w: jnp.dot(a.astype(jnp.bfloat16),
                               w.astype(jnp.bfloat16),
                               preferred_element_type=jnp.float32)
    h = jnp.maximum(_bn_ref(dot(x, p["w1"]), p["g1"], p["be1"]), 0.0)
    h2 = dot(h, p["w2"])
    return jnp.maximum(_bn_ref(h2, p["g2"], p["be2"]) + x, 0.0)


if __name__ == "__main__":
    B = 8
    UNITS = 32          # input_units == output_units (downsample is None)

    key = jax.random.PRNGKey(0)
    kx, kp = jax.random.split(key)
    x = jax.random.normal(kx, (B, UNITS), jnp.float32)
    params = init_params(kp, UNITS, UNITS)

    out = jax.block_until_ready(resblock_forward(x, params))
    assert out.shape == (B, UNITS)

    # Tight check vs a reference that mirrors the kernel's arithmetic.
    ref_k = resblock_reference_kernel_semantics(x, params)
    assert jnp.allclose(out, ref_k, atol=1e-3, rtol=1e-3), \
        "mismatch vs kernel-semantics reference"

    # Loose check vs exact f32 PyTorch semantics (kernel uses bf16 matmuls).
    ref = resblock_reference_f32(x, params)
    assert jnp.allclose(out, ref, atol=1e-1, rtol=1e-1), \
        "mismatch vs f32 reference"

    print("KERNEL_OK")
</pallas_src>

<mosaic_0001>
module attributes {stable_mosaic.version = 11 : i64} {
  func.func @resblock_kernel(%arg0: memref<8x128xf32, #tpu.memory_space<vmem>>, %arg1: memref<128x128xbf16, #tpu.memory_space<vmem>>, %arg2: memref<128x128xbf16, #tpu.memory_space<vmem>>, %arg3: memref<8x128xf32, #tpu.memory_space<vmem>>, %arg4: memref<8x128xf32, #tpu.memory_space<vmem>>) attributes {dimension_semantics = [], scalar_prefetch = 0 : i64, scratch_operands = 0 : i64, tpu.core_type = #tpu.core_type<tc>} {
    %c0 = arith.constant 0 : index
    %c0_0 = arith.constant 0 : index
    %0 = vector.load %arg0[%c0, %c0_0] : memref<8x128xf32, #tpu.memory_space<vmem>>, vector<8x128xf32>
    %c0_1 = arith.constant 0 : index
    %c0_2 = arith.constant 0 : index
    %1 = vector.load %arg3[%c0_1, %c0_2] : memref<8x128xf32, #tpu.memory_space<vmem>>, vector<1x128xf32>
    %c1 = arith.constant 1 : index
    %c0_3 = arith.constant 0 : index
    %2 = vector.load %arg3[%c1, %c0_3] : memref<8x128xf32, #tpu.memory_space<vmem>>, vector<1x128xf32>
    %c2 = arith.constant 2 : index
    %c0_4 = arith.constant 0 : index
    %3 = vector.load %arg3[%c2, %c0_4] : memref<8x128xf32, #tpu.memory_space<vmem>>, vector<1x128xf32>
    %c3 = arith.constant 3 : index
    %c0_5 = arith.constant 0 : index
    %4 = vector.load %arg3[%c3, %c0_5] : memref<8x128xf32, #tpu.memory_space<vmem>>, vector<1x128xf32>
    %5 = arith.truncf %0 : vector<8x128xf32> to vector<8x128xbf16>
    %c0_6 = arith.constant 0 : index
    %c0_7 = arith.constant 0 : index
    %6 = vector.load %arg1[%c0_6, %c0_7] : memref<128x128xbf16, #tpu.memory_space<vmem>>, vector<128x128xbf16>
    %cst = arith.constant dense<0.000000e+00> : vector<8x128xf32>
    %7 = tpu.matmul %5, %6, %cst {dimension_numbers = #tpu.dot_dimension_numbers<[1], [0], [0], [1], [0, 0, 1, 1], [], []>} : vector<8x128xbf16>, vector<128x128xbf16>, vector<8x128xf32> -> vector<8x128xf32>
    %cst_8 = arith.constant dense<0.000000e+00> : vector<128xf32>
    %8 = vector.multi_reduction <add>, %7, %cst_8 [0] : vector<8x128xf32> to vector<128xf32>
    %9 = vector.shape_cast %8 : vector<128xf32> to vector<1x128xf32>
    %cst_9 = arith.constant 8.000000e+00 : f32
    %10 = vector.broadcast %cst_9 : f32 to vector<1x128xf32>
    %11 = arith.divf %9, %10 : vector<1x128xf32>
    %12 = vector.broadcast %11 : vector<1x128xf32> to vector<8x128xf32>
    %13 = arith.subf %7, %12 : vector<8x128xf32>
    %14 = arith.mulf %13, %13 : vector<8x128xf32>
    %cst_10 = arith.constant dense<0.000000e+00> : vector<128xf32>
    %15 = vector.multi_reduction <add>, %14, %cst_10 [0] : vector<8x128xf32> to vector<128xf32>
    %16 = vector.shape_cast %15 : vector<128xf32> to vector<1x128xf32>
    %cst_11 = arith.constant 8.000000e+00 : f32
    %17 = vector.broadcast %cst_11 : f32 to vector<1x128xf32>
    %18 = arith.divf %16, %17 : vector<1x128xf32>
    %cst_12 = arith.constant 9.99999974E-6 : f32
    %19 = vector.broadcast %cst_12 : f32 to vector<1x128xf32>
    %20 = arith.addf %18, %19 : vector<1x128xf32>
    %21 = math.rsqrt %20 : vector<1x128xf32>
    %22 = arith.mulf %1, %21 : vector<1x128xf32>
    %23 = arith.mulf %11, %22 : vector<1x128xf32>
    %24 = arith.subf %2, %23 : vector<1x128xf32>
    %25 = vector.broadcast %22 : vector<1x128xf32> to vector<8x128xf32>
    %26 = arith.mulf %7, %25 : vector<8x128xf32>
    %27 = vector.broadcast %24 : vector<1x128xf32> to vector<8x128xf32>
    %28 = arith.addf %26, %27 : vector<8x128xf32>
    %cst_13 = arith.constant 0.000000e+00 : f32
    %29 = vector.broadcast %cst_13 : f32 to vector<8x128xf32>
    %30 = arith.maximumf %28, %29 : vector<8x128xf32>
    %31 = arith.truncf %30 : vector<8x128xf32> to vector<8x128xbf16>
    %c0_14 = arith.constant 0 : index
    %c0_15 = arith.constant 0 : index
    %32 = vector.load %arg2[%c0_14, %c0_15] : memref<128x128xbf16, #tpu.memory_space<vmem>>, vector<128x128xbf16>
    %cst_16 = arith.constant dense<0.000000e+00> : vector<8x128xf32>
    %33 = tpu.matmul %31, %32, %cst_16 {dimension_numbers = #tpu.dot_dimension_numbers<[1], [0], [0], [1], [0, 0, 1, 1], [], []>} : vector<8x128xbf16>, vector<128x128xbf16>, vector<8x128xf32> -> vector<8x128xf32>
    %cst_17 = arith.constant dense<0.000000e+00> : vector<128xf32>
    %34 = vector.multi_reduction <add>, %33, %cst_17 [0] : vector<8x128xf32> to vector<128xf32>
    %35 = vector.shape_cast %34 : vector<128xf32> to vector<1x128xf32>
    %cst_18 = arith.constant 8.000000e+00 : f32
    %36 = vector.broadcast %cst_18 : f32 to vector<1x128xf32>
    %37 = arith.divf %35, %36 : vector<1x128xf32>
    %38 = vector.broadcast %37 : vector<1x128xf32> to vector<8x128xf32>
    %39 = arith.subf %33, %38 : vector<8x128xf32>
    %40 = arith.mulf %39, %39 : vector<8x128xf32>
    %cst_19 = arith.constant dense<0.000000e+00> : vector<128xf32>
    %41 = vector.multi_reduction <add>, %40, %cst_19 [0] : vector<8x128xf32> to vector<128xf32>
    %42 = vector.shape_cast %41 : vector<128xf32> to vector<1x128xf32>
    %cst_20 = arith.constant 8.000000e+00 : f32
    %43 = vector.broadcast %cst_20 : f32 to vector<1x128xf32>
    %44 = arith.divf %42, %43 : vector<1x128xf32>
    %cst_21 = arith.constant 9.99999974E-6 : f32
    %45 = vector.broadcast %cst_21 : f32 to vector<1x128xf32>
    %46 = arith.addf %44, %45 : vector<1x128xf32>
    %47 = math.rsqrt %46 : vector<1x128xf32>
    %48 = arith.mulf %3, %47 : vector<1x128xf32>
    %49 = arith.mulf %37, %48 : vector<1x128xf32>
    %50 = arith.subf %4, %49 : vector<1x128xf32>
    %51 = vector.broadcast %48 : vector<1x128xf32> to vector<8x128xf32>
    %52 = arith.mulf %33, %51 : vector<8x128xf32>
    %53 = vector.broadcast %50 : vector<1x128xf32> to vector<8x128xf32>
    %54 = arith.addf %52, %53 : vector<8x128xf32>
    %55 = arith.addf %54, %0 : vector<8x128xf32>
    %cst_22 = arith.constant 0.000000e+00 : f32
    %56 = vector.broadcast %cst_22 : f32 to vector<8x128xf32>
    %57 = arith.maximumf %55, %56 : vector<8x128xf32>
    %c0_23 = arith.constant 0 : index
    %c0_24 = arith.constant 0 : index
    %58 = vector.load %arg4[%c0_23, %c0_24] : memref<8x128xf32, #tpu.memory_space<vmem>>, vector<8x128xf32>
    tpu.vector_store %arg4[%c0_23, %c0_24], %57 {strides = array<i32>} : memref<8x128xf32, #tpu.memory_space<vmem>>, vector<8x128xf32>,
    return
  }
}

</mosaic_0001>

<bundles_post_ra>
// kernel: tpu_custom_call.1
= control target key start
LH: loop header
LB: loop body
LE: loop exit
PB: predicated region body
PF: predicated region fallthrough
CT: control target
= control target key end

     0   :  { %9 = vsyncpa [#allocation3], 0  ;;  %s695_s0 = inlined_call_operand.hbm [shape: f32[8,128], index: 0, kind: input, shape index: {}]   ;;  %s696_s1 = inlined_call_operand.hbm [shape: bf16[128,128], index: 1, kind: input, shape index: {}]   ;;  %s697_s2 = inlined_call_operand.hbm [shape: bf16[128,128], index: 2, kind: input, shape index: {}]   ;;  %s698_s3 = inlined_call_operand.hbm [shape: f32[8,128], index: 3, kind: input, shape index: {}]   ;;  %s699_s4 = inlined_call_operand.hbm [shape: f32[8,128], index: 4, kind: output, shape index: {}]  }
   0x1   :  { %10 = vsyncpa [#allocation6], 0 }
   0x2   :  { %11 = vsyncpa [#allocation9], 0 }
   0x3   :  { %12 = vsyncpa [#allocation4], 0  ;;  %s590_s15 = smov [#allocation5]   ;;  %s472_s19 = scalar_lea.hbm %s696_s1, 1024 }
   0x4   :  { %s28_s16 = sshll.u32 %s590_s15, 4  ;;  %p473_p0 = scmp.ne.s32.totalorder %s696_s1, %s472_s19  ;;  %s29_s16 = int_to_ptr.vmem [resolvable:$true] %s28_s16 }
   0x5   :  { %p476_p1 = scmp.lt.u32.totalorder %s472_s19, %s696_s1 }
   0x7   :  { %p478_p2 = pnand %p476_p1, %p473_p0 }
   0x9   :  { %481 = shalt.err (!%p478_p2)
}
   0xa   :  { %s482_s24 = scalar_lea.vmem %s29_s16, 1024  ;;  %p487_p4 = scmp.lt.s32.totalorder %s29_s16, %s29_s16 }
   0xb   :  { %p483_p3 = scmp.ne.s32.totalorder %s29_s16, %s482_s24  ;;  %p488_p5 = scmp.lt.s32.totalorder %s482_s24, %s482_s24 }
   0xd   :  { %p489_p6 = por %p488_p5, %p487_p4 }
   0xf   :  { %p490_p7 = pnand %p489_p6, %p483_p3 }
  0x11   :  { %493 = shalt.err (!%p490_p7)
}
  0x12   :  { %s591_s25 = smov 64   ;;  %s592_s26 = smov 4  }
  0x13   :  { %34 = dma.hbm_to_vmem [thread:$0]  %s696_s1, 1024, %s29_s16, [#allocation6], %s591_s25, %s591_s25, %s592_s26  }
  0x14   :  { %s593_s29 = smov [#allocation2]   ;;  %s594_s5 = smov [#allocation7]  }
  0x15   :  { %s19_s30 = sshll.u32 %s593_s29, 4  ;;  %s40_s6 = sshll.u32 %s594_s5, 4  ;;  %s20_s30 = int_to_ptr.vmem [resolvable:$true] %s19_s30  ;;  %s41_s6 = int_to_ptr.vmem [resolvable:$true] %s40_s6 }
  0x16   :  { %s494_s9 = scalar_lea.hbm %s695_s0, 128 }
  0x17   :  { %p495_p8 = scmp.ne.s32.totalorder %s695_s0, %s494_s9  ;;  %p498_p9 = scmp.lt.u32.totalorder %s494_s9, %s695_s0 }
  0x19   :  { %p500_p10 = pnand %p498_p9, %p495_p8 }
  0x1b   :  { %503 = shalt.err (!%p500_p10)
}
  0x1c   :  { %s504_s1 = scalar_lea.vmem %s20_s30, 128  ;;  %p509_p12 = scmp.lt.s32.totalorder %s20_s30, %s20_s30 }
  0x1d   :  { %p505_p11 = scmp.ne.s32.totalorder %s20_s30, %s504_s1  ;;  %p510_p13 = scmp.lt.s32.totalorder %s504_s1, %s504_s1 }
  0x1f   :  { %p511_p0 = por %p510_p13, %p509_p12 }
  0x21   :  { %p512_p1 = pnand %p511_p0, %p505_p11 }
  0x23   :  { %515 = shalt.err (!%p512_p1)
}
  0x24   :  { %22 = dma.hbm_to_vmem [thread:$0]  %s695_s0, 128, %s20_s30, [#allocation3]  }
  0x25   :  { %s516_s18 = scalar_lea.hbm %s697_s2, 1024 }
  0x26   :  { %p517_p2 = scmp.ne.s32.totalorder %s697_s2, %s516_s18  ;;  %p520_p3 = scmp.lt.u32.totalorder %s516_s18, %s697_s2 }
  0x28   :  { %p522_p4 = pnand %p520_p3, %p517_p2 }
  0x2a   :  { %525 = shalt.err (!%p522_p4)
}
  0x2b   :  { %s526_s23 = scalar_lea.vmem %s41_s6, 1024  ;;  %p531_p6 = scmp.lt.s32.totalorder %s41_s6, %s41_s6 }
  0x2c   :  { %p527_p5 = scmp.ne.s32.totalorder %s41_s6, %s526_s23  ;;  %p532_p7 = scmp.lt.s32.totalorder %s526_s23, %s526_s23 }
  0x2e   :  { %p533_p8 = por %p532_p7, %p531_p6 }
  0x30   :  { %p534_p9 = pnand %p533_p8, %p527_p5 }
  0x32   :  { %537 = shalt.err (!%p534_p9)
}
  0x33   :  { %46 = dma.hbm_to_vmem [thread:$0]  %s697_s2, 1024, %s41_s6, [#allocation6], %s591_s25, %s591_s25, %s592_s26  }
  0x34   :  { %s595_s27 = smov [#allocation8]   ;;  %s538_s5 = scalar_lea.hbm %s698_s3, 128 }
  0x35   :  { %s53_s28 = sshll.u32 %s595_s27, 4  ;;  %p539_p10 = scmp.ne.s32.totalorder %s698_s3, %s538_s5  ;;  %s54_s28 = int_to_ptr.vmem [resolvable:$true] %s53_s28 }
  0x36   :  { %p542_p11 = scmp.lt.u32.totalorder %s538_s5, %s698_s3 }
  0x38   :  { %p544_p12 = pnand %p542_p11, %p539_p10 }
  0x3a   :  { %547 = shalt.err (!%p544_p12)
}
  0x3b   :  { %s548_s11 = scalar_lea.vmem %s54_s28, 128  ;;  %p553_p0 = scmp.lt.s32.totalorder %s54_s28, %s54_s28 }
  0x3c   :  { %p549_p13 = scmp.ne.s32.totalorder %s54_s28, %s548_s11  ;;  %p554_p1 = scmp.lt.s32.totalorder %s548_s11, %s548_s11 }
  0x3e   :  { %p555_p2 = por %p554_p1, %p553_p0 }
  0x40   :  { %p556_p3 = pnand %p555_p2, %p549_p13 }
  0x42   :  { %559 = shalt.err (!%p556_p3)
}
  0x43   :  { %56 = dma.hbm_to_vmem [thread:$0]  %s698_s3, 128, %s54_s28, [#allocation9]  }
  0x44   :  { %582 = dma.done.wait [#allocation3], 128  }
  0x45   :  { %583 = vsyncadd [#allocation3], 4294967168 }
  0x46   :  { %584 = dma.done.wait [#allocation6], 2048  }
  0x47   :  { %585 = vsyncadd [#allocation6], 4294965248 }
  0x48   :  { %586 = dma.done.wait [#allocation9], 128  }
  0x49   :  { %587 = vsyncadd [#allocation9], 4294967168  ;;  %v596_v0 = vmov 0.0   ;;  %vm597_vm0 = vmmov 0   ;;  %v452_v1 = vld [vmem:[#allocation5] sm:$0xff]   ;;  %v453_v2 = vld [vmem:[#allocation5 + $0x8] sm:$0xff]   ;;  %v202_v40 = vlaneseq }
  0x4a   :  { %403 = vmatprep.subr.bf16.mxu0 %v596_v0  ;;  %419 = vmatprep.mubr.msk.bf16.mxu0 %vm597_vm0, %v596_v0  ;;  %v454_v3 = vld [vmem:[#allocation5 + $0x10] sm:$0xff]   ;;  %v455_v4 = vld [vmem:[#allocation5 + $0x18] sm:$0xff]   ;;  %v456_v5 = vld [vmem:[#allocation5 + $0x20] sm:$0xff]   ;;  %s598_s3 = smov [#allocation10]  }
  0x4b   :  { %423 = vmatprep.subr.bf16.mxu1 %v596_v0  ;;  %439 = vmatprep.mubr.msk.bf16.mxu1 %vm597_vm0, %v596_v0  ;;  %v457_v6 = vld [vmem:[#allocation5 + $0x28] sm:$0xff]   ;;  %v458_v7 = vld [vmem:[#allocation5 + $0x30] sm:$0xff]   ;;  %v459_v8 = vld [vmem:[#allocation5 + $0x38] sm:$0xff]   ;;  %v203_v41 = vshrl.u32 %v202_v40, 7  ;;  %s358_s26 = sshll.u32 %s598_s3, 4  ;;  %s359_s26 = int_to_ptr.vmem [resolvable:$true] %s358_s26 }
  0x4c   :  { %404 = vmatpush3.bf16.msra.mxu0 %v452_v1  ;;  %v678_v9 = vld [vmem:[#allocation2] sm:$0xff]  ;;  %v460_v11 = vld [vmem:[#allocation7] sm:$0xff]   ;;  %v461_v12 = vld [vmem:[#allocation7 + $0x8] sm:$0xff]   ;;  %s560_s6 = scalar_lea.vmem %s359_s26, 128  ;;  %p565_p5 = scmp.lt.s32.totalorder %s359_s26, %s359_s26 }
  0x4d   :  { %405 = vmatprep.subr.bf16.mxu0 %v596_v0  ;;  %v75_v10 = vpack.c.bf16 %v678_v9, %v678_v9  ;;  %424 = vmatpush3.bf16.msra.mxu1 %v460_v11  ;;  %v462_v13 = vld [vmem:[#allocation7 + $0x10] sm:$0xff]   ;;  %v463_v14 = vld [vmem:[#allocation7 + $0x18] sm:$0xff]   ;;  %v464_v15 = vld [vmem:[#allocation7 + $0x20] sm:$0xff]   ;;  %v204_v43 = vsub.s32 0, %v203_v41  ;;  %p561_p4 = scmp.ne.s32.totalorder %s359_s26, %s560_s6  ;;  %p566_p6 = scmp.lt.s32.totalorder %s560_s6, %s560_s6 }
  0x4e   :  { %425 = vmatprep.subr.bf16.mxu1 %v596_v0  ;;  %v465_v16 = vld [vmem:[#allocation7 + $0x28] sm:$0xff]   ;;  %v466_v17 = vld [vmem:[#allocation7 + $0x30] sm:$0xff]   ;;  %v467_v18 = vld [vmem:[#allocation7 + $0x38] sm:$0xff]  }
  0x4f   :  { %v71_v42 = vld [vmem:[#allocation8] sm:$0x1]  ;;  %v72_v46 = vld [vmem:[#allocation8 + $0x1] sm:$0x1]  ;;  %p567_p7 = por %p566_p6, %p565_p5 }
  0x50   :  { %406 = vmatpush3.bf16.msra.mxu0 %v453_v2 }
  0x51   :  { %407 = vmatprep.subr.bf16.mxu0 %v596_v0  ;;  %426 = vmatpush3.bf16.msra.mxu1 %v461_v12  ;;  %p568_p8 = pnand %p567_p7, %p561_p4 }
  0x52   :  { %427 = vmatprep.subr.bf16.mxu1 %v596_v0 }
  0x54   :  { %408 = vmatpush3.bf16.msra.mxu0 %v454_v3 }
  0x55   :  { %409 = vmatprep.subr.bf16.mxu0 %v596_v0  ;;  %428 = vmatpush3.bf16.msra.mxu1 %v462_v13  ;;  %v73_v13 = vld [vmem:[#allocation8 + $0x2] sm:$0x1] }
  0x56   :  { %429 = vmatprep.subr.bf16.mxu1 %v596_v0 }
  0x58   :  { %410 = vmatpush3.bf16.msra.mxu0 %v455_v4 }
  0x59   :  { %411 = vmatprep.subr.bf16.mxu0 %v596_v0  ;;  %430 = vmatpush3.bf16.msra.mxu1 %v463_v14 }
  0x5a   :  { %431 = vmatprep.subr.bf16.mxu1 %v596_v0 }
  0x5c   :  { %412 = vmatpush3.bf16.msra.mxu0 %v456_v5 }
  0x5d   :  { %413 = vmatprep.subr.bf16.mxu0 %v596_v0  ;;  %432 = vmatpush3.bf16.msra.mxu1 %v464_v15 }
  0x5e   :  { %433 = vmatprep.subr.bf16.mxu1 %v596_v0 }
  0x60   :  { %414 = vmatpush3.bf16.msra.mxu0 %v457_v6 }
  0x61   :  { %415 = vmatprep.subr.bf16.mxu0 %v596_v0  ;;  %434 = vmatpush3.bf16.msra.mxu1 %v465_v16  ;;  %v74_v16 = vld [vmem:[#allocation8 + $0x3] sm:$0x1] }
  0x62   :  { %435 = vmatprep.subr.bf16.mxu1 %v596_v0 }
  0x64   :  { %416 = vmatpush3.bf16.msra.mxu0 %v458_v7 }
  0x65   :  { %417 = vmatprep.subr.bf16.mxu0 %v596_v0  ;;  %436 = vmatpush3.bf16.msra.mxu1 %v466_v17 }
  0x66   :  { %437 = vmatprep.subr.bf16.mxu1 %v596_v0 }
  0x68   :  { %418 = vmatpush3.bf16.msra.mxu0 %v459_v8 }
  0x69   :  { %438 = vmatpush3.bf16.msra.mxu1 %v467_v18 }
  0x6b   :  { %420 = vmatmul.mubr.bf16.vlgmr.msra.gmra.mrb[0].mxu0 %v75_v10 }
 0x13e   :  { %v174_v19 = vpop.f32.mrb[0].mxu0 }
 0x13f   :  { %v180_v20 = vrot.slane %v174_v19, 4  ;;  %v421_v21 = vpop.f32.mrb[1].mxu0 }
 0x140   :  { %v177_v22 = vpop.f32.mrb[2].mxu0 }
 0x141   :  { %v181_v23 = vadd.f32 %v180_v20, %v174_v19  ;;  %v422_v24 = vpop.f32.mrb[3].mxu0 }
 0x143   :  { %v182_v25 = vrot.slane %v181_v23, 2 }
 0x145   :  { %v183_v26 = vadd.f32 %v182_v25, %v181_v23 }
 0x147   :  { %v184_v27 = vrot.slane %v183_v26, 1 }
 0x149   :  { %v185_v28 = vadd.f32 %v184_v27, %v183_v26 }
 0x14b   :  { %v187_v29 = vmul.f32 0.125, %v185_v28 }
 0x14d   :  { %v188_v30 = vsub.f32 %v174_v19, %v187_v29 }
 0x14f   :  { %v189_v31 = vmul.f32 %v188_v30, %v188_v30 }
 0x151   :  { %v190_v32 = vrot.slane %v189_v31, 4 }
 0x153   :  { %v191_v33 = vadd.f32 %v190_v32, %v189_v31 }
 0x155   :  { %v192_v34 = vrot.slane %v191_v33, 2 }
 0x157   :  { %v193_v35 = vadd.f32 %v192_v34, %v191_v33 }
 0x159   :  { %v194_v36 = vrot.slane %v193_v35, 1 }
 0x15b   :  { %v195_v37 = vadd.f32 %v194_v36, %v193_v35 }
 0x15d   :  { %v196_v38 = vmul.f32 0.125, %v195_v37 }
 0x15f   :  { %v197_v39 = vadd.f32 1e-05, %v196_v38 }
 0x161   :  { %468 = vrsqrt.f32 %v197_v39 }
 0x16b   :  { %v469_v44 = vpop.eup %468 }
 0x16c   :  { %v199_v45 = vmul.f32 %v469_v44, %v71_v42 }
 0x16e   :  { %v200_v47 = vmul.f32 %v199_v45, %v187_v29  ;;  %v205_v48 = vrot.slane %v199_v45, %v204_v43 }
 0x170   :  { %v201_v49 = vsub.f32 %v72_v46, %v200_v47  ;;  %v206_v50 = vmul.f32 %v205_v48, %v174_v19 }
 0x172   :  { %v210_v51 = vrot.slane %v201_v49, %v204_v43 }
 0x174   :  { %v211_v52 = vadd.f32 %v210_v51, %v206_v50 }
 0x176   :  { %v212_v53 = vmax.f32 %v211_v52, 0.0 }
 0x178   :  { %v213_v54 = vpack.c.bf16 %v212_v53, %v212_v53 }
 0x17a   :  { %440 = vmatmul.mubr.bf16.vlgmr.msra.gmra.mrb[0].mxu1 %v213_v54 }
 0x24d   :  { %v312_v55 = vpop.f32.mrb[0].mxu1 }
 0x24e   :  { %v318_v56 = vrot.slane %v312_v55, 4  ;;  %v441_v57 = vpop.f32.mrb[1].mxu1 }
 0x24f   :  { %v315_v58 = vpop.f32.mrb[2].mxu1 }
 0x250   :  { %v319_v59 = vadd.f32 %v318_v56, %v312_v55  ;;  %v442_v60 = vpop.f32.mrb[3].mxu1 }
 0x252   :  { %v320_v61 = vrot.slane %v319_v59, 2 }
 0x254   :  { %v321_v62 = vadd.f32 %v320_v61, %v319_v59 }
 0x256   :  { %v322_v63 = vrot.slane %v321_v62, 1 }
 0x258   :  { %v323_v0 = vadd.f32 %v322_v63, %v321_v62 }
 0x25a   :  { %v324_v1 = vmul.f32 0.125, %v323_v0 }
 0x25c   :  { %v325_v2 = vsub.f32 %v312_v55, %v324_v1 }
 0x25e   :  { %v326_v3 = vmul.f32 %v325_v2, %v325_v2 }
 0x260   :  { %v327_v4 = vrot.slane %v326_v3, 4 }
 0x262   :  { %v328_v5 = vadd.f32 %v327_v4, %v326_v3 }
 0x264   :  { %v329_v6 = vrot.slane %v328_v5, 2 }
 0x266   :  { %v330_v7 = vadd.f32 %v329_v6, %v328_v5 }
 0x268   :  { %v331_v8 = vrot.slane %v330_v7, 1 }
 0x26a   :  { %v332_v10 = vadd.f32 %v331_v8, %v330_v7 }
 0x26c   :  { %v333_v11 = vmul.f32 0.125, %v332_v10 }
 0x26e   :  { %v334_v12 = vadd.f32 1e-05, %v333_v11 }
 0x270   :  { %470 = vrsqrt.f32 %v334_v12 }
 0x27a   :  { %v471_v14 = vpop.eup %470 }
 0x27b   :  { %v336_v15 = vmul.f32 %v471_v14, %v73_v13 }
 0x27d   :  { %v337_v17 = vmul.f32 %v336_v15, %v324_v1  ;;  %v342_v18 = vrot.slane %v336_v15, %v204_v43 }
 0x27f   :  { %v338_v19 = vsub.f32 %v74_v16, %v337_v17  ;;  %v343_v20 = vmul.f32 %v342_v18, %v312_v55 }
 0x281   :  { %v347_v21 = vrot.slane %v338_v19, %v204_v43 }
 0x283   :  { %v348_v22 = vadd.f32 %v347_v21, %v343_v20 }
 0x285   :  { %v349_v23 = vadd.f32 %v348_v22, %v678_v9 }
 0x287   :  { %v350_v24 = vmax.f32 %v349_v23, 0.0 }
 0x289   :  { %351 = vst [vmem:[#allocation10] sm:$0xff] %v350_v24 }
 0x28a   :  { %571 = shalt.err (!%p568_p8)
}
 0x28b   :  { %s572_s1 = scalar_lea.hbm %s699_s4, 128 }
 0x28c   :  { %p573_p9 = scmp.ne.s32.totalorder %s699_s4, %s572_s1  ;;  %p576_p10 = scmp.lt.u32.totalorder %s572_s1, %s699_s4 }
 0x28e   :  { %p578_p11 = pnand %p576_p10, %p573_p9 }
 0x290   :  { %581 = shalt.err (!%p578_p11)
}
 0x291   :  { %361 = dma.vmem_to_hbm [thread:$0]  %s359_s26, 128, %s699_s4, [#allocation4]  }
 0x292   :  { %588 = dma.done.wait [#allocation4], 128  }
 0x293   :  { %589 = vsyncadd [#allocation4], 4294967168 }
 0x294   :  { %365 = vsyncpa [#allocation3], 1 }
 0x295   :  { %366 = vsyncpa [#allocation6], 1 }
 0x296   :  { %367 = vsyncpa [#allocation9], 1 }
 0x297   :  { %368 = vsyncpa [#allocation4], 1 }

</bundles_post_ra>
